<compile_context>
chip_gen: v5e
topology: v5e:2x2
jax: 0.10.0
libtpu: 0.0.40
codegen_flags: <defaults>
</compile_context>

<pallas_src>
import jax
import jax.numpy as jnp
from jax.experimental import pallas as pl
from jax.experimental.pallas import tpu as pltpu


# ---------------------------------------------------------------------------
# Kernels
# ---------------------------------------------------------------------------
def linear_kernel(params_ref, x_ref, y_ref):
    # params (SMEM, f32[3]): [w00, w01, bias]
    # x: (2, B) lane-dense  ->  y: (1, B) lane-dense.
    w0 = params_ref[0]
    w1 = params_ref[1]
    b = params_ref[2]
    x = x_ref[...]                                      # one vld; both rows in one vreg
    y = w0 * x[0:1, :] + w1 * x[1:2, :] + b             # pure VPU, 2 FMAs
    y_ref[...] = y.astype(y_ref.dtype)


def fused_loss_kernel(params_ref, x_ref, labels_ref, loss_ref):
    # params (SMEM, f32[3]): [w00, w01, bias]
    # x: (2, B), labels: (1, B)  ->  loss: (1, 1) SMEM scalar.  (No y output.)
    w0 = params_ref[0]
    w1 = params_ref[1]
    b = params_ref[2]
    x = x_ref[...]
    y = w0 * x[0:1, :] + w1 * x[1:2, :] + b             # (1, B) f32

    # PyTorch semantics: (labels(B,) - outputs(B,1)).sum() broadcasts to (B,B):
    #   sum_{i,j} (labels[j] - y[i]) == B * sum(labels - y)   (single lane reduce)
    n = labels_ref.shape[-1]                             # static Python int (no padding at this size)
    loss_ref[0, 0] = jnp.sum(labels_ref[...] - y) * n


# ---------------------------------------------------------------------------
# Wrappers
# ---------------------------------------------------------------------------
def _pack_params(w, b):
    # nn.Linear(2, 1): w (1, 2), b (1,)  ->  f32[3] = [w00, w01, bias]
    return jnp.concatenate([w.reshape(-1), b.reshape(-1)]).astype(jnp.float32)


def linear_pallas(x_lane, w, b):
    # x_lane: (2, B) lane-dense.  Returns (1, B) lane-dense linear outputs.
    B = x_lane.shape[1]
    params = _pack_params(w, b)
    return pl.pallas_call(
        linear_kernel,
        out_shape=jax.ShapeDtypeStruct((1, B), x_lane.dtype),
        in_specs=[
            pl.BlockSpec(memory_space=pltpu.MemorySpace.SMEM),   # params f32[3]
            pl.BlockSpec(memory_space=pltpu.MemorySpace.VMEM),   # x (2, B)
        ],
        out_specs=pl.BlockSpec(memory_space=pltpu.MemorySpace.VMEM),
    )(params, x_lane)


def loss_pallas(x_lane, labels_lane, w, b):
    # x_lane: (2, B), labels_lane: (1, B).  Returns scalar loss (fused, single kernel,
    # no y writeback).
    params = _pack_params(w, b)
    loss = pl.pallas_call(
        fused_loss_kernel,
        out_shape=jax.ShapeDtypeStruct((1, 1), jnp.float32),
        in_specs=[
            pl.BlockSpec(memory_space=pltpu.MemorySpace.SMEM),   # params f32[3]
            pl.BlockSpec(memory_space=pltpu.MemorySpace.VMEM),   # x (2, B)
            pl.BlockSpec(memory_space=pltpu.MemorySpace.VMEM),   # labels (1, B)
        ],
        out_specs=pl.BlockSpec(memory_space=pltpu.MemorySpace.SMEM),  # loss (1, 1)
    )(params, x_lane, labels_lane)
    return loss[0, 0]


def toy_model_forward(inputs, data_sample, w, b, mode="tensor"):
    # Module API: `inputs` is a list of (2,) tensors, `data_sample` a list of scalars.
    # We stack ONCE, directly into the lane-major layouts the kernels want
    # (no transpose XLA op around the pallas_call).
    if isinstance(inputs, (list, tuple)):
        x_lane = jnp.stack(inputs, axis=1)                       # (2, B) lane-dense
    else:
        x = jnp.asarray(inputs)
        x_lane = x if x.shape[0] == 2 else x.T                   # accept pre-stacked (B,2)
    x_lane = x_lane.astype(jnp.float32)

    if isinstance(data_sample, (list, tuple)):
        labels_lane = jnp.stack(data_sample).reshape(1, -1)      # (1, B)
    else:
        labels_lane = jnp.asarray(data_sample).reshape(1, -1)
    labels_lane = labels_lane.astype(jnp.float32)

    if mode == "loss":
        return dict(loss=loss_pallas(x_lane, labels_lane, w, b))  # fused: 1 kernel, 1 scalar out

    y = linear_pallas(x_lane, w, b)                               # (1, B) lane-dense
    # Contiguous metadata-only reshape to nn.Linear's (B, 1) output shape.
    return y.reshape(-1, 1)


# ---------------------------------------------------------------------------
# Main
# ---------------------------------------------------------------------------
if __name__ == "__main__":
    key = jax.random.PRNGKey(0)
    kw, kb, kx, kl = jax.random.split(key, 4)

    # Deterministic parameter init (nn.Linear(2, 1) shapes).
    w = jax.random.normal(kw, (1, 2), dtype=jnp.float32) * 0.5
    b = jax.random.normal(kb, (1,), dtype=jnp.float32) * 0.1

    # Small example "dataset": list of (2,) inputs, list of scalar labels (module API).
    B = 8
    xs = jax.random.normal(kx, (B, 2), dtype=jnp.float32)
    ys = jax.random.normal(kl, (B,), dtype=jnp.float32)
    inputs_list = [xs[i] for i in range(B)]
    labels_list = [ys[i] for i in range(B)]

    # mode='tensor'
    out = toy_model_forward(inputs_list, labels_list, w, b, mode="tensor")
    out = jax.block_until_ready(out)

    # mode='loss' (single fused kernel, scalar-only output)
    loss_dict = toy_model_forward(inputs_list, labels_list, w, b, mode="loss")
    loss = jax.block_until_ready(loss_dict["loss"])

    # Reference check against plain JAX (same semantics as the torch module,
    # including the (B,) - (B,1) -> (B,B) broadcast in the loss).
    ref_out = xs @ w.T + b                    # (B, 1)
    ref_loss = jnp.sum(ys - ref_out)          # broadcast (B, B) sum
    assert out.shape == (B, 1), out.shape
    assert jnp.allclose(out, ref_out, atol=1e-5), (out, ref_out)
    assert jnp.allclose(loss, ref_loss, atol=1e-4), (loss, ref_loss)

    print("KERNEL_OK")
</pallas_src>

<mosaic_0001>
module attributes {stable_mosaic.version = 11 : i64} {
  func.func @linear_kernel(%arg0: memref<3xf32, #tpu.memory_space<smem>>, %arg1: memref<2x8xf32, #tpu.memory_space<vmem>>, %arg2: memref<1x8xf32, #tpu.memory_space<vmem>>) attributes {dimension_semantics = [], scalar_prefetch = 0 : i64, scratch_operands = 0 : i64, tpu.core_type = #tpu.core_type<tc>} {
    %c0 = arith.constant 0 : index
    %0 = memref.load %arg0[%c0] : memref<3xf32, #tpu.memory_space<smem>>
    %c1 = arith.constant 1 : index
    %1 = memref.load %arg0[%c1] : memref<3xf32, #tpu.memory_space<smem>>
    %c2 = arith.constant 2 : index
    %2 = memref.load %arg0[%c2] : memref<3xf32, #tpu.memory_space<smem>>
    %c0_0 = arith.constant 0 : index
    %c0_1 = arith.constant 0 : index
    %3 = vector.load %arg1[%c0_0, %c0_1] : memref<2x8xf32, #tpu.memory_space<vmem>>, vector<2x8xf32>
    %4 = vector.extract_strided_slice %3 {offsets = [0, 0], sizes = [1, 8], strides = [1, 1]} : vector<2x8xf32> to vector<1x8xf32>
    %5 = vector.broadcast %0 : f32 to vector<1x8xf32>
    %6 = arith.mulf %5, %4 : vector<1x8xf32>
    %7 = vector.extract_strided_slice %3 {offsets = [1, 0], sizes = [1, 8], strides = [1, 1]} : vector<2x8xf32> to vector<1x8xf32>
    %8 = vector.broadcast %1 : f32 to vector<1x8xf32>
    %9 = arith.mulf %8, %7 : vector<1x8xf32>
    %10 = arith.addf %6, %9 : vector<1x8xf32>
    %11 = vector.broadcast %2 : f32 to vector<1x8xf32>
    %12 = arith.addf %10, %11 : vector<1x8xf32>
    %c0_2 = arith.constant 0 : index
    %c0_3 = arith.constant 0 : index
    %13 = vector.load %arg2[%c0_2, %c0_3] : memref<1x8xf32, #tpu.memory_space<vmem>>, vector<1x8xf32>
    tpu.vector_store %arg2[%c0_2, %c0_3], %12 {strides = array<i32>} : memref<1x8xf32, #tpu.memory_space<vmem>>, vector<1x8xf32>,
    return
  }
}

</mosaic_0001>

<bundles_post_ra>
// kernel: tpu_custom_call.1
= control target key start
LH: loop header
LB: loop body
LE: loop exit
PB: predicated region body
PF: predicated region fallthrough
CT: control target
= control target key end

     0   :  { %7 = vsyncpa [#allocation5], 0  ;;  %s171_s0 = inlined_call_operand.hbm [shape: f32[3], index: 0, kind: input, shape index: {}]   ;;  %s172_s1 = inlined_call_operand.hbm [shape: f32[2,8], index: 1, kind: input, shape index: {}]   ;;  %s173_s2 = inlined_call_operand.hbm [shape: f32[1,8], index: 2, kind: output, shape index: {}]  }
   0x1   :  { %8 = vsyncpa [#allocation3], 0 }
   0x2   :  { %9 = vsyncpa [#allocation4], 0  ;;  %s15_s11 = sshll.u32 %s171_s0, 4  ;;  %s24_s14 = sshll.u32 %s172_s1, 4  ;;  %s16_s11 = int_to_ptr.hbm [resolvable:$true] %s15_s11  ;;  %s25_s14 = int_to_ptr.hbm [resolvable:$true] %s24_s14 }
   0x3   :  { %s144_s15 = smov [#allocation2]   ;;  %s145_s16 = smov [#allocation6]  }
   0x4   :  { %18 = dma.hbm_to_smem %s16_s11, 16, %s144_s15, [#allocation5]  }
   0x5   :  { %s26_s17 = sshll.u32 %s145_s16, 4  ;;  %s27_s17 = int_to_ptr.vmem [resolvable:$true] %s26_s17 }
   0x6   :  { %29 = dma.hbm_to_vmem [thread:$0]  %s25_s14, 32, %s27_s17, [#allocation3]  }
   0x7   :  { %138 = dma.done.wait [#allocation5], 16  }
   0x8   :  { %139 = vsyncadd [#allocation5], 4294967280 }
   0x9   :  { %140 = dma.done.wait [#allocation3], 32  }
   0xa   :  { %141 = vsyncadd [#allocation3], 4294967264 }
   0xb   :  { %38 = sfence }
   0xc   :  { %s39_s18 = sld [smem:[#allocation2]]  ;;  %v42_v0 = vld [vmem:[#allocation6] sm:$0x3]  ;;  %s146_s1 = smov [#allocation7]   ;;  %vm53_vm0 = vcmask 57344  }
   0xd   :  { %s73_s19 = sld [smem:[#allocation2 + $0x1]]  ;;  %s60_s20 = sshll.u32 %s146_s1, 4  ;;  %s61_s20 = int_to_ptr.vmem [resolvable:$true] %s60_s20 }
   0xe   :  { %s74_s0 = sld [smem:[#allocation2 + $0x2]]  ;;  %s62_s23 = sshll.u32 %s173_s2, 4  ;;  %s63_s23 = int_to_ptr.hbm [resolvable:$true] %s62_s23 }
  0x12   :  { %v43_v1 = vstv %s39_s18 }
  0x13   :  { %v45_v2 = vstv %s73_s19  ;;  %v44_v3 = vmul.f32 %v43_v1, %v42_v0 }
  0x14   :  { %v46_v4 = vmul.f32 %v45_v2, %v42_v0  ;;  %v51_v6 = vstv %s74_s0 }
  0x16   :  { %v48_v5 = vrot.slane %v46_v4, 1 }
  0x18   :  { %v50_v7 = vadd.f32 %v48_v5, %v44_v3 }
  0x1a   :  { %v52_v8 = vadd.f32 %v51_v6, %v50_v7 }
  0x1c   :  { %54 = vst.msk [vmem:[#allocation7] sm:$0x1] %vm53_vm0, %v52_v8 }
  0x1d   :  { %65 = dma.vmem_to_hbm [thread:$0]  %s61_s20, 16, %s63_s23, [#allocation4]  }
  0x1e   :  { %142 = dma.done.wait [#allocation4], 16  }
  0x1f   :  { %143 = vsyncadd [#allocation4], 4294967280 }
  0x20   :  { %70 = vsyncpa [#allocation3], 1 }
  0x21   :  { %71 = vsyncpa [#allocation4], 1 }
  0x22   :  { %72 = vsyncpa [#allocation5], 1 }

</bundles_post_ra>
